<compile_context>
chip_gen: v5e
topology: v5e:2x2
jax: 0.10.0
libtpu: 0.0.40
codegen_flags: <defaults>
</compile_context>

<pallas_src>
import jax
import jax.numpy as jnp
from jax.experimental import pallas as pl
from jax.experimental.pallas import tpu as pltpu

FIN, FOUT = 256, 784


def _round_up(x, m):
    return ((x + m - 1) // m) * m


def _ceil_div(a, b):
    return -(-a // b)


def _choose_tile_m(batch, max_tile=512):
    """Pick an M tile: full batch when tiny, otherwise >=2 balanced 8-aligned tiles."""
    if batch < 16:
        return batch                              # full-dim block, grid = (1,)
    n_tiles = max(2, _ceil_div(batch, max_tile))  # >=2 so v7x gets both TCs
    return min(_round_up(_ceil_div(batch, n_tiles), 8), max_tile)


# ----------------------------------------------------------------------------
# Pallas kernel: one (tile_m, K) x (K, N) matmul tile + bias, f32 accumulate.
# ----------------------------------------------------------------------------
def _linear_bias_kernel(x_ref, w_ref, b_ref, o_ref):
    x = x_ref[...].astype(jnp.bfloat16)                 # in-kernel cast (VPU slack)
    acc = jnp.dot(x, w_ref[...], preferred_element_type=jnp.float32)
    o_ref[...] = (acc + b_ref[...]).astype(o_ref.dtype)


def linear_bias(x, w_t, b_row, *, out_dtype=jnp.float32):
    """x:(B,256) @ w_t:(256,784) + b:(1,784); bf16 operands, f32 accumulate.

    Output is written at its true width (784 = full-dim block) — no padding
    pass.  The batch axis is tiled with a 'parallel' grid (pipelined, and
    sharded across TensorCores on v7x); a partial last block handles any
    remainder (out-of-bounds rows are never written back).
    """
    B, K = x.shape
    K2, N = w_t.shape
    assert K == K2 and b_row.shape == (1, N)

    tile_m = _choose_tile_m(B)
    grid = (pl.cdiv(B, tile_m),)

    return pl.pallas_call(
        _linear_bias_kernel,
        out_shape=jax.ShapeDtypeStruct((B, N), out_dtype),
        grid=grid,
        in_specs=[
            pl.BlockSpec((tile_m, K), lambda i: (i, 0)),   # activations tile
            pl.BlockSpec((K, N), lambda i: (0, 0)),        # weights stay resident
            pl.BlockSpec((1, N), lambda i: (0, 0)),        # bias stays resident
        ],
        out_specs=pl.BlockSpec((tile_m, N), lambda i: (i, 0)),
        compiler_params=pltpu.CompilerParams(
            dimension_semantics=("parallel",),
        ),
    )(x, w_t, b_row)


# ----------------------------------------------------------------------------
# Parameters: pre-transposed (fin, fout), pre-cast bf16 weights, f32 row bias.
# ----------------------------------------------------------------------------
def init_params(key):
    k_w, k_b = jax.random.split(key)
    bound = 1.0 / jnp.sqrt(jnp.float32(FIN))      # mimic nn.Linear default init
    w_t = jax.random.uniform(k_w, (FIN, FOUT), jnp.float32, -bound, bound)
    b = jax.random.uniform(k_b, (FOUT,), jnp.float32, -bound, bound)
    return {
        "w_t": w_t.astype(jnp.bfloat16),                  # (256, 784), bf16
        "b": b.reshape(1, FOUT).astype(jnp.float32),      # (1, 784), f32
    }


# ----------------------------------------------------------------------------
# Forward pass: matches AE_Decoder_Fc.forward
# ----------------------------------------------------------------------------
def ae_decoder_fc_forward(x, params, *, out_dtype=jnp.float32):
    h = linear_bias(x, params["w_t"], params["b"], out_dtype=out_dtype)  # (B, 784)
    return h.reshape(x.shape[0], 1, 28, 28)              # .view(B, 1, 28, 28)


if __name__ == "__main__":
    batch = 2
    key = jax.random.PRNGKey(0)
    k_x, k_p = jax.random.split(key)

    x = jax.random.normal(k_x, (batch, FIN), jnp.float32)
    params = init_params(k_p)

    fwd = jax.jit(ae_decoder_fc_forward)
    out = jax.block_until_ready(fwd(x, params))

    assert out.shape == (batch, 1, 28, 28), out.shape
    assert jnp.all(jnp.isfinite(out))

    # Pure-JAX reference (f32 math on the bf16-stored weights).
    ref = (x @ params["w_t"].astype(jnp.float32) + params["b"]).reshape(
        batch, 1, 28, 28
    )
    assert jnp.allclose(out, ref, atol=3e-2, rtol=3e-2), float(
        jnp.max(jnp.abs(out - ref))
    )

    print("KERNEL_OK")
</pallas_src>

<mosaic_0001>
module attributes {stable_mosaic.version = 11 : i64} {
  func.func @_linear_bias_kernel(%arg0: i32, %arg1: memref<2x256xf32, #tpu.memory_space<vmem>>, %arg2: memref<256x784xbf16, #tpu.memory_space<vmem>>, %arg3: memref<1x784xf32, #tpu.memory_space<vmem>>, %arg4: memref<2x784xf32, #tpu.memory_space<vmem>>) attributes {dimension_semantics = [#tpu.dimension_semantics<parallel>], iteration_bounds = array<i64: 1>, scalar_prefetch = 0 : i64, scratch_operands = 0 : i64, tpu.core_type = #tpu.core_type<tc>, window_params = [{transform_indices = @transform_0, window_bounds = array<i64: 2, 256>}, {pipeline_mode = #tpu.pipeline_mode<synchronous>, transform_indices = @transform_1, window_bounds = array<i64: 256, 784>}, {pipeline_mode = #tpu.pipeline_mode<synchronous>, transform_indices = @transform_2, window_bounds = array<i64: 1, 784>}, {transform_indices = @transform_3, window_bounds = array<i64: 2, 784>}]} {
    %c0 = arith.constant 0 : index
    %c0_0 = arith.constant 0 : index
    %0 = vector.load %arg1[%c0, %c0_0] : memref<2x256xf32, #tpu.memory_space<vmem>>, vector<2x256xf32>
    %1 = arith.truncf %0 : vector<2x256xf32> to vector<2x256xbf16>
    %c0_1 = arith.constant 0 : index
    %c0_2 = arith.constant 0 : index
    %2 = vector.load %arg2[%c0_1, %c0_2] : memref<256x784xbf16, #tpu.memory_space<vmem>>, vector<256x784xbf16>
    %cst = arith.constant dense<0.000000e+00> : vector<2x784xf32>
    %3 = tpu.matmul %1, %2, %cst {dimension_numbers = #tpu.dot_dimension_numbers<[1], [0], [0], [1], [0, 0, 1, 1], [], []>} : vector<2x256xbf16>, vector<256x784xbf16>, vector<2x784xf32> -> vector<2x784xf32>
    %c0_3 = arith.constant 0 : index
    %c0_4 = arith.constant 0 : index
    %4 = vector.load %arg3[%c0_3, %c0_4] : memref<1x784xf32, #tpu.memory_space<vmem>>, vector<1x784xf32>
    %5 = vector.broadcast %4 : vector<1x784xf32> to vector<2x784xf32>
    %6 = arith.addf %3, %5 : vector<2x784xf32>
    %c0_5 = arith.constant 0 : index
    %c0_6 = arith.constant 0 : index
    %7 = vector.load %arg4[%c0_5, %c0_6] : memref<2x784xf32, #tpu.memory_space<vmem>>, vector<2x784xf32>
    tpu.vector_store %arg4[%c0_5, %c0_6], %6 {strides = array<i32>} : memref<2x784xf32, #tpu.memory_space<vmem>>, vector<2x784xf32>,
    return
  }
  func.func @transform_0(%arg0: i32) -> (i32, i32) {
    %c0_i32 = arith.constant 0 : i32
    %c0_i32_0 = arith.constant 0 : i32
    return %arg0, %c0_i32 : i32, i32
  }
  func.func @transform_1(%arg0: i32) -> (i32, i32) {
    %c0_i32 = arith.constant 0 : i32
    %c0_i32_0 = arith.constant 0 : i32
    %c0_i32_1 = arith.constant 0 : i32
    return %c0_i32, %c0_i32_0 : i32, i32
  }
  func.func @transform_2(%arg0: i32) -> (i32, i32) {
    %c0_i32 = arith.constant 0 : i32
    %c0_i32_0 = arith.constant 0 : i32
    %c0_i32_1 = arith.constant 0 : i32
    return %c0_i32, %c0_i32_0 : i32, i32
  }
  func.func @transform_3(%arg0: i32) -> (i32, i32) {
    %c0_i32 = arith.constant 0 : i32
    %c0_i32_0 = arith.constant 0 : i32
    return %arg0, %c0_i32 : i32, i32
  }
}

</mosaic_0001>

<bundles_post_ra>
// kernel: ae_decoder_fc_forward.1
= control target key start
LH: loop header
LB: loop body
LE: loop exit
PB: predicated region body
PF: predicated region fallthrough
CT: control target
= control target key end

     0   :  { %vm937_vm0 = vcmask 1041408   ;;  %vm939_vm1 = vcmask 1045508   ;;  %vm941_vm2 = vcmask 1043456   ;;  %vm948_vm3 = vcmask 1043458   ;;  %s2244_s1 = inlined_call_operand.vmem [shape: bf16[256,784], index: 1, kind: input, shape index: {}]   ;;  %s2245_s0 = inlined_call_operand.vmem [shape: f32[2,256], index: 0, kind: input, shape index: {}]   ;;  %s2246_s2 = inlined_call_operand.vmem [shape: f32[1,784], index: 2, kind: input, shape index: {}]   ;;  %s2247_s3 = inlined_call_operand.vmem [shape: f32[2,784], index: 3, kind: output, shape index: {}]  }
   0x1   :  { %v1155_v0 = vld [vmem:[%s2244_s1 + $0x188] sm:$0xf]  ;;  %v1457_v1 = vld [vmem:[%s2244_s1 + $0x1a0] sm:$0xf0]  ;;  %v1454_v5 = vld [vmem:[%s2244_s1 + $0x18c] sm:$0xf] }
   0x2   :  { %v1379_v2 = vld [vmem:[%s2244_s1 + $0x348] sm:$0xf]  ;;  %v1156_v3 = vor.u32 %v1457_v1, %v1155_v0  ;;  %v1513_v4 = vld [vmem:[%s2244_s1 + $0x360] sm:$0xf0]  ;;  %v1510_v9 = vld [vmem:[%s2244_s1 + $0x34c] sm:$0xf] }
   0x3   :  { %v1157_v6 = vld [vmem:[%s2244_s1 + $0x1a4] sm:$0xf0]  ;;  %v1380_v7 = vor.u32 %v1513_v4, %v1379_v2  ;;  %v1127_v11 = vld [vmem:[%s2244_s1 + $0x150] sm:$0xf]  ;;  %v1450_v13 = vld [vmem:[%s2244_s1 + $0x168] sm:$0xf0] }
   0x4   :  { %v1160_v8 = vor.u32 %v1454_v5, %v1157_v6  ;;  %v1381_v10 = vld [vmem:[%s2244_s1 + $0x364] sm:$0xf0]  ;;  %743 = vmatpush.bf16.msra.mxu0 %v1156_v3  ;;  %v1351_v14 = vld [vmem:[%s2244_s1 + $0x310] sm:$0xf]  ;;  %v1506_v15 = vld [vmem:[%s2244_s1 + $0x328] sm:$0xf0]  ;;  %v1128_v16 = vor.u32 %v1450_v13, %v1127_v11 }
   0x5   :  { %v1384_v12 = vor.u32 %v1510_v9, %v1381_v10  ;;  %756 = vmatpush.bf16.msra.mxu1 %v1380_v7  ;;  %v1352_v17 = vor.u32 %v1506_v15, %v1351_v14  ;;  %v1447_v18 = vld [vmem:[%s2244_s1 + $0x154] sm:$0xf]  ;;  %v1129_v19 = vld [vmem:[%s2244_s1 + $0x16c] sm:$0xf0]  ;;  %v1099_v23 = vld [vmem:[%s2244_s1 + $0x118] sm:$0xf] }
   0x6   :  { %769 = vmatpush.bf16.msra.mxu2 %v1160_v8  ;;  %v1503_v20 = vld [vmem:[%s2244_s1 + $0x314] sm:$0xf]  ;;  %v1132_v21 = vor.u32 %v1447_v18, %v1129_v19  ;;  %v1353_v22 = vld [vmem:[%s2244_s1 + $0x32c] sm:$0xf0]  ;;  %v1323_v26 = vld [vmem:[%s2244_s1 + $0x2d8] sm:$0xf] }
   0x7   :  { %782 = vmatpush.bf16.msra.mxu3 %v1384_v12  ;;  %v1443_v24 = vld [vmem:[%s2244_s1 + $0x130] sm:$0xf0]  ;;  %v1356_v25 = vor.u32 %v1503_v20, %v1353_v22  ;;  %v1440_v28 = vld [vmem:[%s2244_s1 + $0x11c] sm:$0xf]  ;;  %v1101_v30 = vld [vmem:[%s2244_s1 + $0x134] sm:$0xf0] }
   0x8   :  { %v1499_v27 = vld [vmem:[%s2244_s1 + $0x2f0] sm:$0xf0]  ;;  %744 = vmatpush.bf16.msra.mxu0 %v1128_v16  ;;  %v1100_v29 = vor.u32 %v1443_v24, %v1099_v23  ;;  %v1496_v31 = vld [vmem:[%s2244_s1 + $0x2dc] sm:$0xf]  ;;  %v1325_v32 = vld [vmem:[%s2244_s1 + $0x2f4] sm:$0xf0]  ;;  %v1104_v34 = vor.u32 %v1440_v28, %v1101_v30 }
   0x9   :  { %757 = vmatpush.bf16.msra.mxu1 %v1352_v17  ;;  %v1324_v33 = vor.u32 %v1499_v27, %v1323_v26  ;;  %v1071_v35 = vld [vmem:[%s2244_s1 + $0xe0] sm:$0xf]  ;;  %v1436_v36 = vld [vmem:[%s2244_s1 + $0xf8] sm:$0xf0]  ;;  %v1328_v38 = vor.u32 %v1496_v31, %v1325_v32  ;;  %v1433_v40 = vld [vmem:[%s2244_s1 + $0xe4] sm:$0xf] }
   0xa   :  { %770 = vmatpush.bf16.msra.mxu2 %v1132_v21  ;;  %v1295_v37 = vld [vmem:[%s2244_s1 + $0x2a0] sm:$0xf]  ;;  %v1492_v39 = vld [vmem:[%s2244_s1 + $0x2b8] sm:$0xf0]  ;;  %v1489_v42 = vld [vmem:[%s2244_s1 + $0x2a4] sm:$0xf]  ;;  %v1072_v44 = vor.u32 %v1436_v36, %v1071_v35 }
   0xb   :  { %783 = vmatpush.bf16.msra.mxu3 %v1356_v25  ;;  %v1073_v41 = vld [vmem:[%s2244_s1 + $0xfc] sm:$0xf0]  ;;  %v1296_v45 = vor.u32 %v1492_v39, %v1295_v37  ;;  %v1043_v47 = vld [vmem:[%s2244_s1 + $0xa8] sm:$0xf]  ;;  %v1429_v48 = vld [vmem:[%s2244_s1 + $0xc0] sm:$0xf0] }
   0xc   :  { %v1297_v43 = vld [vmem:[%s2244_s1 + $0x2bc] sm:$0xf0]  ;;  %745 = vmatpush.bf16.msra.mxu0 %v1100_v29  ;;  %v1076_v46 = vor.u32 %v1433_v40, %v1073_v41  ;;  %v1267_v49 = vld [vmem:[%s2244_s1 + $0x268] sm:$0xf]  ;;  %v1485_v51 = vld [vmem:[%s2244_s1 + $0x280] sm:$0xf0]  ;;  %v1044_v56 = vor.u32 %v1429_v48, %v1043_v47 }
   0xd   :  { %758 = vmatpush.bf16.msra.mxu1 %v1324_v33  ;;  %v1300_v50 = vor.u32 %v1489_v42, %v1297_v43  ;;  %v1426_v52 = vld [vmem:[%s2244_s1 + $0xac] sm:$0xf]  ;;  %v1045_v53 = vld [vmem:[%s2244_s1 + $0xc4] sm:$0xf0]  ;;  %v1268_v57 = vor.u32 %v1485_v51, %v1267_v49  ;;  %v1015_v59 = vld [vmem:[%s2244_s1 + $0x70] sm:$0xf] }
   0xe   :  { %771 = vmatpush.bf16.msra.mxu2 %v1104_v34  ;;  %v1482_v54 = vld [vmem:[%s2244_s1 + $0x26c] sm:$0xf]  ;;  %v1269_v55 = vld [vmem:[%s2244_s1 + $0x284] sm:$0xf0]  ;;  %v1048_v58 = vor.u32 %v1426_v52, %v1045_v53  ;;  %v1239_v61 = vld [vmem:[%s2244_s1 + $0x230] sm:$0xf] }
   0xf   :  { %784 = vmatpush.bf16.msra.mxu3 %v1328_v38  ;;  %v1422_v60 = vld [vmem:[%s2244_s1 + $0x88] sm:$0xf0]  ;;  %v1272_v62 = vor.u32 %v1482_v54, %v1269_v55  ;;  %v1419_v0 = vld [vmem:[%s2244_s1 + $0x74] sm:$0xf]  ;;  %v1017_v1 = vld [vmem:[%s2244_s1 + $0x8c] sm:$0xf0] }
  0x10   :  { %746 = vmatpush.bf16.msra.mxu0 %v1072_v44  ;;  %v1478_v63 = vld [vmem:[%s2244_s1 + $0x248] sm:$0xf0]  ;;  %v1475_v2 = vld [vmem:[%s2244_s1 + $0x234] sm:$0xf]  ;;  %v1241_v3 = vld [vmem:[%s2244_s1 + $0x24c] sm:$0xf0]  ;;  %v1016_v4 = vor.u32 %v1422_v60, %v1015_v59  ;;  %v1020_v6 = vor.u32 %v1419_v0, %v1017_v1 }
  0x11   :  { %759 = vmatpush.bf16.msra.mxu1 %v1296_v45  ;;  %v1240_v5 = vor.u32 %v1478_v63, %v1239_v61  ;;  %v987_v7 = vld [vmem:[%s2244_s1 + $0x38] sm:$0xf]  ;;  %v1415_v8 = vld [vmem:[%s2244_s1 + $0x50] sm:$0xf0]  ;;  %v1244_v10 = vor.u32 %v1475_v2, %v1241_v3  ;;  %v1412_v12 = vld [vmem:[%s2244_s1 + $0x3c] sm:$0xf] }
  0x12   :  { %772 = vmatpush.bf16.msra.mxu2 %v1076_v46  ;;  %v1211_v9 = vld [vmem:[%s2244_s1 + $0x1f8] sm:$0xf]  ;;  %v1471_v11 = vld [vmem:[%s2244_s1 + $0x210] sm:$0xf0]  ;;  %v1468_v14 = vld [vmem:[%s2244_s1 + $0x1fc] sm:$0xf]  ;;  %v988_v16 = vor.u32 %v1415_v8, %v987_v7 }
  0x13   :  { %785 = vmatpush.bf16.msra.mxu3 %v1300_v50  ;;  %v989_v13 = vld [vmem:[%s2244_s1 + $0x54] sm:$0xf0]  ;;  %v959_v17 = vld [vmem:[%s2244_s1] sm:$0xf]  ;;  %v1408_v18 = vld [vmem:[%s2244_s1 + $0x18] sm:$0xf0]  ;;  %v1212_v19 = vor.u32 %v1471_v11, %v1211_v9 }
  0x14   :  { %747 = vmatpush.bf16.msra.mxu0 %v1044_v56  ;;  %v1213_v15 = vld [vmem:[%s2244_s1 + $0x214] sm:$0xf0]  ;;  %v992_v20 = vor.u32 %v1412_v12, %v989_v13  ;;  %v1183_v21 = vld [vmem:[%s2244_s1 + $0x1c0] sm:$0xf]  ;;  %v1464_v22 = vld [vmem:[%s2244_s1 + $0x1d8] sm:$0xf0]  ;;  %v960_v31 = vor.u32 %v1408_v18, %v959_v17 }
  0x15   :  { %760 = vmatpush.bf16.msra.mxu1 %v1268_v57  ;;  %v1405_v23 = vld [vmem:[%s2244_s1 + $0x4] sm:$0xf]  ;;  %v1216_v24 = vor.u32 %v1468_v14, %v1213_v15  ;;  %v961_v25 = vld [vmem:[%s2244_s1 + $0x1c] sm:$0xf0]  ;;  %v1163_v26 = vld [vmem:[%s2244_s1 + $0x190] sm:$0xf]  ;;  %v1184_v35 = vor.u32 %v1464_v22, %v1183_v21 }
  0x16   :  { %773 = vmatpush.bf16.msra.mxu2 %v1048_v58  ;;  %v1458_v27 = vld [vmem:[%s2244_s1 + $0x1a8] sm:$0xf0]  ;;  %v1387_v28 = vld [vmem:[%s2244_s1 + $0x350] sm:$0xf]  ;;  %v1455_v30 = vld [vmem:[%s2244_s1 + $0x194] sm:$0xf]  ;;  %v964_v36 = vor.u32 %v1405_v23, %v961_v25 }
  0x17   :  { %786 = vmatpush.bf16.msra.mxu3 %v1272_v62  ;;  %v1514_v29 = vld [vmem:[%s2244_s1 + $0x368] sm:$0xf0]  ;;  %v1165_v32 = vld [vmem:[%s2244_s1 + $0x1ac] sm:$0xf0]  ;;  %v1461_v33 = vld [vmem:[%s2244_s1 + $0x1c4] sm:$0xf]  ;;  %v1164_v39 = vor.u32 %v1458_v27, %v1163_v26 }
  0x18   :  { %748 = vmatpush.bf16.msra.mxu0 %v1016_v4  ;;  %v1185_v34 = vld [vmem:[%s2244_s1 + $0x1dc] sm:$0xf0]  ;;  %v1511_v37 = vld [vmem:[%s2244_s1 + $0x354] sm:$0xf]  ;;  %v1389_v38 = vld [vmem:[%s2244_s1 + $0x36c] sm:$0xf0]  ;;  %v1388_v40 = vor.u32 %v1514_v29, %v1387_v28  ;;  %v1168_v42 = vor.u32 %v1455_v30, %v1165_v32 }
  0x19   :  { %761 = vmatpush.bf16.msra.mxu1 %v1240_v5  ;;  %v1135_v41 = vld [vmem:[%s2244_s1 + $0x158] sm:$0xf]  ;;  %v1188_v43 = vor.u32 %v1461_v33, %v1185_v34  ;;  %v1451_v44 = vld [vmem:[%s2244_s1 + $0x170] sm:$0xf0]  ;;  %v1392_v47 = vor.u32 %v1511_v37, %v1389_v38  ;;  %v1448_v48 = vld [vmem:[%s2244_s1 + $0x15c] sm:$0xf] }
  0x1a   :  { %774 = vmatpush.bf16.msra.mxu2 %v1020_v6  ;;  %v1359_v45 = vld [vmem:[%s2244_s1 + $0x318] sm:$0xf]  ;;  %v1507_v46 = vld [vmem:[%s2244_s1 + $0x330] sm:$0xf0]  ;;  %v1504_v50 = vld [vmem:[%s2244_s1 + $0x31c] sm:$0xf]  ;;  %v1136_v53 = vor.u32 %v1451_v44, %v1135_v41 }
  0x1b   :  { %787 = vmatpush.bf16.msra.mxu3 %v1244_v10  ;;  %v1137_v49 = vld [vmem:[%s2244_s1 + $0x174] sm:$0xf0]  ;;  %v14_v52 = vld [vmem:[%s2245_s0] sm:$0xf]  ;;  %v1360_v54 = vor.u32 %v1507_v46, %v1359_v45  ;;  %v1444_v57 = vld [vmem:[%s2244_s1 + $0x138] sm:$0xf0] }
  0x1c   :  { %749 = vmatpush.bf16.msra.mxu0 %v988_v16  ;;  %v1361_v51 = vld [vmem:[%s2244_s1 + $0x334] sm:$0xf0]  ;;  %v1107_v55 = vld [vmem:[%s2244_s1 + $0x120] sm:$0xf]  ;;  %16 = vst [vmem:[#allocation1] ss:$4 sm:$0xff] %v14_v52  ;;  %v1140_v56 = vor.u32 %v1448_v48, %v1137_v49  ;;  %vm949_vm4 = vmor %vm948_vm3, %vm937_vm0 }
  0x1d   :  { %762 = vmatpush.bf16.msra.mxu1 %v1212_v19  ;;  %v1331_v58 = vld [vmem:[%s2244_s1 + $0x2e0] sm:$0xf]  ;;  %v1500_v59 = vld [vmem:[%s2244_s1 + $0x2f8] sm:$0xf0]  ;;  %v1364_v60 = vor.u32 %v1504_v50, %v1361_v51  ;;  %v1441_v61 = vld [vmem:[%s2244_s1 + $0x124] sm:$0xf]  ;;  %v1108_v1 = vor.u32 %v1444_v57, %v1107_v55 }
  0x1e   :  { %775 = vmatpush.bf16.msra.mxu2 %v992_v20  ;;  %v1109_v62 = vld [vmem:[%s2244_s1 + $0x13c] sm:$0xf0]  ;;  %v1497_v63 = vld [vmem:[%s2244_s1 + $0x2e4] sm:$0xf]  ;;  %v1332_v2 = vor.u32 %v1500_v59, %v1331_v58  ;;  %v1079_v3 = vld [vmem:[%s2244_s1 + $0xe8] sm:$0xf] }
  0x1f   :  { %788 = vmatpush.bf16.msra.mxu3 %v1216_v24  ;;  %v1333_v0 = vld [vmem:[%s2244_s1 + $0x2fc] sm:$0xf0]  ;;  %v1437_v4 = vld [vmem:[%s2244_s1 + $0x100] sm:$0xf0]  ;;  %v1112_v5 = vor.u32 %v1441_v61, %v1109_v62  ;;  %v1303_v6 = vld [vmem:[%s2244_s1 + $0x2a8] sm:$0xf] }
  0x20   :  { %750 = vmatpush.bf16.msra.mxu0 %v960_v31  ;;  %v1493_v7 = vld [vmem:[%s2244_s1 + $0x2c0] sm:$0xf0]  ;;  %v1434_v8 = vld [vmem:[%s2244_s1 + $0xec] sm:$0xf]  ;;  %v1336_v9 = vor.u32 %v1497_v63, %v1333_v0  ;;  %v1081_v10 = vld [vmem:[%s2244_s1 + $0x104] sm:$0xf0]  ;;  %v1080_v13 = vor.u32 %v1437_v4, %v1079_v3 }
  0x21   :  { %763 = vmatpush.bf16.msra.mxu1 %v1184_v35  ;;  %v1490_v11 = vld [vmem:[%s2244_s1 + $0x2ac] sm:$0xf]  ;;  %v1305_v12 = vld [vmem:[%s2244_s1 + $0x2c4] sm:$0xf0]  ;;  %v1304_v16 = vor.u32 %v1493_v7, %v1303_v6  ;;  %v1051_v18 = vld [vmem:[%s2244_s1 + $0xb0] sm:$0xf]  ;;  %v1084_v20 = vor.u32 %v1434_v8, %v1081_v10 }
  0x22   :  { %776 = vmatpush.bf16.msra.mxu2 %v964_v36  ;;  %v1430_v21 = vld [vmem:[%s2244_s1 + $0xc8] sm:$0xf0]  ;;  %v1275_v22 = vld [vmem:[%s2244_s1 + $0x270] sm:$0xf]  ;;  %v1308_v24 = vor.u32 %v1490_v11, %v1305_v12  ;;  %v1427_v25 = vld [vmem:[%s2244_s1 + $0xb4] sm:$0xf] }
  0x23   :  { %789 = vmatpush.bf16.msra.mxu3 %v1188_v43  ;;  %v17_v14 = vld.sshfl [vmem:[#allocation1] sm:$0xff pattern:$0x73625140]  ;;  %v18_v15 = vld.sshfl [vmem:[#allocation1 + $0x8] sm:$0xff pattern:$0x73625140]  ;;  %v1052_v29 = vor.u32 %v1430_v21, %v1051_v18 }
  0x24   :  { %795 = vmatpush.bf16.msrb.mxu0 %v1164_v39  ;;  %v1828_v17 = vpack.c.bf16 %v17_v14, %v17_v14  ;;  %v1833_v19 = vpack.c.bf16 %v18_v15, %v18_v15  ;;  %v1486_v23 = vld [vmem:[%s2244_s1 + $0x288] sm:$0xf0]  ;;  %v1053_v26 = vld [vmem:[%s2244_s1 + $0xcc] sm:$0xf0]  ;;  %v1483_v27 = vld [vmem:[%s2244_s1 + $0x274] sm:$0xf] }
  0x25   :  { %808 = vmatpush.bf16.msrb.mxu1 %v1388_v40  ;;  %v1277_v28 = vld [vmem:[%s2244_s1 + $0x28c] sm:$0xf0]  ;;  %v1276_v30 = vor.u32 %v1486_v23, %v1275_v22  ;;  %v1023_v31 = vld [vmem:[%s2244_s1 + $0x78] sm:$0xf]  ;;  %v1056_v32 = vor.u32 %v1427_v25, %v1053_v26  ;;  %v1423_v33 = vld [vmem:[%s2244_s1 + $0x90] sm:$0xf0] }
  0x26   :  { %821 = vmatpush.bf16.msrb.mxu2 %v1168_v42  ;;  %790 = vmatmul.bf16.vlgmr.msra.gmra.mxu3 %v1833_v19  ;;  %v1247_v34 = vld [vmem:[%s2244_s1 + $0x238] sm:$0xf]  ;;  %v1479_v35 = vld [vmem:[%s2244_s1 + $0x250] sm:$0xf0]  ;;  %v1280_v36 = vor.u32 %v1483_v27, %v1277_v28  ;;  %v1420_v37 = vld [vmem:[%s2244_s1 + $0x7c] sm:$0xf]  ;;  %v1024_v41 = vor.u32 %v1423_v33, %v1023_v31 }
  0x27   :  { %834 = vmatpush.bf16.msrb.mxu3 %v1392_v47  ;;  %777 = vmatmul.bf16.vlgmr.msra.gmra.mxu2 %v1828_v17  ;;  %v1025_v38 = vld [vmem:[%s2244_s1 + $0x94] sm:$0xf0]  ;;  %v1476_v39 = vld [vmem:[%s2244_s1 + $0x23c] sm:$0xf]  ;;  %v1248_v42 = vor.u32 %v1479_v35, %v1247_v34  ;;  %v995_v43 = vld [vmem:[%s2244_s1 + $0x40] sm:$0xf] }
  0x28   :  { %796 = vmatpush.bf16.msrb.mxu0 %v1136_v53  ;;  %764 = vmatmul.bf16.vlgmr.msra.gmra.mxu1 %v1833_v19  ;;  %v1249_v40 = vld [vmem:[%s2244_s1 + $0x254] sm:$0xf0]  ;;  %v1028_v44 = vor.u32 %v1420_v37, %v1025_v38  ;;  %v1416_v45 = vld [vmem:[%s2244_s1 + $0x58] sm:$0xf0]  ;;  %v1219_v46 = vld [vmem:[%s2244_s1 + $0x200] sm:$0xf] }
  0x29   :  { %809 = vmatpush.bf16.msrb.mxu1 %v1360_v54  ;;  %751 = vmatmul.bf16.vlgmr.msra.gmra.mxu0 %v1828_v17  ;;  %v1472_v47 = vld [vmem:[%s2244_s1 + $0x218] sm:$0xf0]  ;;  %v1252_v48 = vor.u32 %v1476_v39, %v1249_v40  ;;  %v1413_v49 = vld [vmem:[%s2244_s1 + $0x44] sm:$0xf]  ;;  %v997_v50 = vld [vmem:[%s2244_s1 + $0x5c] sm:$0xf0]  ;;  %v996_v54 = vor.u32 %v1416_v45, %v995_v43 }
  0x2a   :  { %822 = vmatpush.bf16.msrb.mxu2 %v1140_v56  ;;  %v1469_v51 = vld [vmem:[%s2244_s1 + $0x204] sm:$0xf]  ;;  %v1221_v52 = vld [vmem:[%s2244_s1 + $0x21c] sm:$0xf0]  ;;  %v967_v53 = vld [vmem:[%s2244_s1 + $0x8] sm:$0xf]  ;;  %v1220_v55 = vor.u32 %v1472_v47, %v1219_v46  ;;  %v1000_v59 = vor.u32 %v1413_v49, %v997_v50 }
  0x2b   :  { %835 = vmatpush.bf16.msrb.mxu3 %v1364_v60  ;;  %v1409_v56 = vld [vmem:[%s2244_s1 + $0x20] sm:$0xf0]  ;;  %v1191_v57 = vld [vmem:[%s2244_s1 + $0x1c8] sm:$0xf]  ;;  %v1406_v60 = vld [vmem:[%s2244_s1 + $0xc] sm:$0xf]  ;;  %v1224_v63 = vor.u32 %v1469_v51, %v1221_v52 }
  0x2c   :  { %797 = vmatpush.bf16.msrb.mxu0 %v1108_v1  ;;  %v1465_v58 = vld [vmem:[%s2244_s1 + $0x1e0] sm:$0xf0]  ;;  %v969_v61 = vld [vmem:[%s2244_s1 + $0x24] sm:$0xf0]  ;;  %v1171_v62 = vld [vmem:[%s2244_s1 + $0x198] sm:$0xf]  ;;  %v968_v6 = vor.u32 %v1409_v56, %v967_v53 }
  0x2d   :  { %810 = vmatpush.bf16.msrb.mxu1 %v1332_v2  ;;  %v1459_v0 = vld [vmem:[%s2244_s1 + $0x1b0] sm:$0xf0]  ;;  %v1395_v1 = vld [vmem:[%s2244_s1 + $0x358] sm:$0xf]  ;;  %v1462_v3 = vld [vmem:[%s2244_s1 + $0x1cc] sm:$0xf]  ;;  %v1192_v7 = vor.u32 %v1465_v58, %v1191_v57  ;;  %v972_v11 = vor.u32 %v1406_v60, %v969_v61 }
  0x2e   :  { %823 = vmatpush.bf16.msrb.mxu2 %v1112_v5  ;;  %v1515_v2 = vld [vmem:[%s2244_s1 + $0x370] sm:$0xf0]  ;;  %v1193_v4 = vld [vmem:[%s2244_s1 + $0x1e4] sm:$0xf0]  ;;  %v1456_v5 = vld [vmem:[%s2244_s1 + $0x19c] sm:$0xf]  ;;  %v1172_v12 = vor.u32 %v1459_v0, %v1171_v62 }
  0x2f   :  { %836 = vmatpush.bf16.msrb.mxu3 %v1336_v9  ;;  %v1173_v8 = vld [vmem:[%s2244_s1 + $0x1b4] sm:$0xf0]  ;;  %v1512_v9 = vld [vmem:[%s2244_s1 + $0x35c] sm:$0xf]  ;;  %v1196_v14 = vor.u32 %v1462_v3, %v1193_v4  ;;  %v1143_v15 = vld [vmem:[%s2244_s1 + $0x160] sm:$0xf] }
  0x30   :  { %798 = vmatpush.bf16.msrb.mxu0 %v1080_v13  ;;  %v1397_v10 = vld [vmem:[%s2244_s1 + $0x374] sm:$0xf0]  ;;  %v1396_v13 = vor.u32 %v1515_v2, %v1395_v1  ;;  %v1176_v18 = vor.u32 %v1456_v5, %v1173_v8  ;;  %v1508_v21 = vld [vmem:[%s2244_s1 + $0x338] sm:$0xf0]  ;;  %v1449_v23 = vld [vmem:[%s2244_s1 + $0x164] sm:$0xf] }
  0x31   :  { %811 = vmatpush.bf16.msrb.mxu1 %v1304_v16  ;;  %v1452_v16 = vld [vmem:[%s2244_s1 + $0x178] sm:$0xf0]  ;;  %v1400_v22 = vor.u32 %v1512_v9, %v1397_v10  ;;  %v1505_v25 = vld [vmem:[%s2244_s1 + $0x324] sm:$0xf]  ;;  %v1369_v26 = vld [vmem:[%s2244_s1 + $0x33c] sm:$0xf0] }
  0x32   :  { %824 = vmatpush.bf16.msrb.mxu2 %v1084_v20  ;;  %v1367_v20 = vld [vmem:[%s2244_s1 + $0x320] sm:$0xf]  ;;  %v1144_v27 = vor.u32 %v1452_v16, %v1143_v15  ;;  %v1501_v33 = vld [vmem:[%s2244_s1 + $0x300] sm:$0xf0]  ;;  %v1372_v34 = vor.u32 %v1505_v25, %v1369_v26  ;;  %v1442_v35 = vld [vmem:[%s2244_s1 + $0x12c] sm:$0xf] }
  0x33   :  { %837 = vmatpush.bf16.msrb.mxu3 %v1308_v24  ;;  %v1145_v24 = vld [vmem:[%s2244_s1 + $0x17c] sm:$0xf0]  ;;  %v1368_v28 = vor.u32 %v1508_v21, %v1367_v20  ;;  %v1498_v37 = vld [vmem:[%s2244_s1 + $0x2ec] sm:$0xf]  ;;  %v1341_v38 = vld [vmem:[%s2244_s1 + $0x304] sm:$0xf0] }
  0x34   :  { %799 = vmatpush.bf16.msrb.mxu0 %v1052_v29  ;;  %v1115_v29 = vld [vmem:[%s2244_s1 + $0x128] sm:$0xf]  ;;  %v1148_v31 = vor.u32 %v1449_v23, %v1145_v24  ;;  %v1494_v45 = vld [vmem:[%s2244_s1 + $0x2c8] sm:$0xf0]  ;;  %v1344_v46 = vor.u32 %v1498_v37, %v1341_v38  ;;  %v1435_v47 = vld [vmem:[%s2244_s1 + $0xf4] sm:$0xf] }
  0x35   :  { %812 = vmatpush.bf16.msrb.mxu1 %v1276_v30  ;;  %v1445_v30 = vld [vmem:[%s2244_s1 + $0x140] sm:$0xf0]  ;;  %v1491_v49 = vld [vmem:[%s2244_s1 + $0x2b4] sm:$0xf]  ;;  %v1313_v50 = vld [vmem:[%s2244_s1 + $0x2cc] sm:$0xf0] }
  0x36   :  { %825 = vmatpush.bf16.msrb.mxu2 %v1056_v32  ;;  %v1339_v32 = vld [vmem:[%s2244_s1 + $0x2e8] sm:$0xf]  ;;  %v1116_v39 = vor.u32 %v1445_v30, %v1115_v29  ;;  %v1059_v53 = vld [vmem:[%s2244_s1 + $0xb8] sm:$0xf]  ;;  %v1487_v57 = vld [vmem:[%s2244_s1 + $0x290] sm:$0xf0]  ;;  %v1316_v58 = vor.u32 %v1491_v49, %v1313_v50 }
  0x37   :  { %838 = vmatpush.bf16.msrb.mxu3 %v1280_v36  ;;  %v1117_v36 = vld [vmem:[%s2244_s1 + $0x144] sm:$0xf0]  ;;  %v1340_v40 = vor.u32 %v1501_v33, %v1339_v32  ;;  %v1283_v56 = vld [vmem:[%s2244_s1 + $0x278] sm:$0xf]  ;;  %v1484_v61 = vld [vmem:[%s2244_s1 + $0x27c] sm:$0xf] }
  0x38   :  { %800 = vmatpush.bf16.msrb.mxu0 %v1024_v41  ;;  %v1087_v41 = vld [vmem:[%s2244_s1 + $0xf0] sm:$0xf]  ;;  %v1120_v43 = vor.u32 %v1442_v35, %v1117_v36  ;;  %v1061_v60 = vld [vmem:[%s2244_s1 + $0xd4] sm:$0xf0]  ;;  %v1284_v0 = vor.u32 %v1487_v57, %v1283_v56  ;;  %v1031_v1 = vld [vmem:[%s2244_s1 + $0x80] sm:$0xf] }
  0x39   :  { %813 = vmatpush.bf16.msrb.mxu1 %v1248_v42  ;;  %v1438_v42 = vld [vmem:[%s2244_s1 + $0x108] sm:$0xf0]  ;;  %v1285_v62 = vld [vmem:[%s2244_s1 + $0x294] sm:$0xf0]  ;;  %v1424_v2 = vld [vmem:[%s2244_s1 + $0x98] sm:$0xf0] }
  0x3a   :  { %826 = vmatpush.bf16.msrb.mxu2 %v1028_v44  ;;  %v1311_v44 = vld [vmem:[%s2244_s1 + $0x2b0] sm:$0xf]  ;;  %v1088_v51 = vor.u32 %v1438_v42, %v1087_v41  ;;  %v1255_v4 = vld [vmem:[%s2244_s1 + $0x240] sm:$0xf]  ;;  %v1480_v5 = vld [vmem:[%s2244_s1 + $0x258] sm:$0xf0] }
  0x3b   :  { %839 = vmatpush.bf16.msrb.mxu3 %v1252_v48  ;;  %v1089_v48 = vld [vmem:[%s2244_s1 + $0x10c] sm:$0xf0]  ;;  %v1312_v52 = vor.u32 %v1494_v45, %v1311_v44  ;;  %v1033_v8 = vld [vmem:[%s2244_s1 + $0x9c] sm:$0xf0]  ;;  %v1477_v9 = vld [vmem:[%s2244_s1 + $0x244] sm:$0xf] }
  0x3c   :  { %801 = vmatpush.bf16.msrb.mxu0 %v996_v54  ;;  %v1431_v54 = vld [vmem:[%s2244_s1 + $0xd0] sm:$0xf0]  ;;  %v1257_v10 = vld [vmem:[%s2244_s1 + $0x25c] sm:$0xf0]  ;;  %v1227_v16 = vld [vmem:[%s2244_s1 + $0x208] sm:$0xf] }
  0x3d   :  { %814 = vmatpush.bf16.msrb.mxu1 %v1220_v55  ;;  %v1092_v55 = vor.u32 %v1435_v47, %v1089_v48  ;;  %v1260_v20 = vor.u32 %v1477_v9, %v1257_v10  ;;  %v1414_v21 = vld [vmem:[%s2244_s1 + $0x4c] sm:$0xf]  ;;  %v1229_v24 = vld [vmem:[%s2244_s1 + $0x224] sm:$0xf0]  ;;  %v975_v26 = vld [vmem:[%s2244_s1 + $0x10] sm:$0xf] }
  0x3e   :  { %827 = vmatpush.bf16.msrb.mxu2 %v1000_v59  ;;  %v1428_v59 = vld [vmem:[%s2244_s1 + $0xbc] sm:$0xf]  ;;  %v1470_v23 = vld [vmem:[%s2244_s1 + $0x20c] sm:$0xf]  ;;  %v1199_v29 = vld [vmem:[%s2244_s1 + $0x1d0] sm:$0xf] }
  0x3f   :  { %840 = vmatpush.bf16.msrb.mxu3 %v1224_v63  ;;  %v1060_v63 = vor.u32 %v1431_v54, %v1059_v53  ;;  %v1064_v3 = vor.u32 %v1428_v59, %v1061_v60  ;;  %v1466_v30 = vld [vmem:[%s2244_s1 + $0x1e8] sm:$0xf0]  ;;  %v1232_v32 = vor.u32 %v1470_v23, %v1229_v24  ;;  %v1179_v33 = vld [vmem:[%s2244_s1 + $0x1a0] sm:$0xf]  ;;  %v1516_v36 = vld [vmem:[%s2244_s1 + $0x378] sm:$0xf0] }
  0x40   :  { %802 = vmatpush.bf16.msrb.mxu0 %v968_v6  ;;  %v1288_v6 = vor.u32 %v1484_v61, %v1285_v62  ;;  %v1403_v35 = vld [vmem:[%s2244_s1 + $0x360] sm:$0xf]  ;;  %v1407_v37 = vld [vmem:[%s2244_s1 + $0x14] sm:$0xf]  ;;  %v977_v38 = vld [vmem:[%s2244_s1 + $0x2c] sm:$0xf0]  ;;  %v1200_v42 = vor.u32 %v1466_v30, %v1199_v29 }
  0x41   :  { %815 = vmatpush.bf16.msrb.mxu1 %v1192_v7  ;;  %v1421_v7 = vld [vmem:[%s2244_s1 + $0x84] sm:$0xf]  ;;  %v1201_v41 = vld [vmem:[%s2244_s1 + $0x1ec] sm:$0xf0]  ;;  %v1404_v44 = vor.u32 %v1516_v36, %v1403_v35  ;;  %v980_v45 = vor.u32 %v1407_v37, %v977_v38  ;;  %v1375_v49 = vld [vmem:[%s2244_s1 + $0x328] sm:$0xf] }
  0x42   :  { %828 = vmatpush.bf16.msrb.mxu2 %v972_v11  ;;  %v1032_v11 = vor.u32 %v1424_v2, %v1031_v1  ;;  %v1036_v15 = vor.u32 %v1421_v7, %v1033_v8  ;;  %v1453_v47 = vld [vmem:[%s2244_s1 + $0x180] sm:$0xf0]  ;;  %v1123_v53 = vld [vmem:[%s2244_s1 + $0x130] sm:$0xf]  ;;  %v1446_v54 = vld [vmem:[%s2244_s1 + $0x148] sm:$0xf0] }
  0x43   :  { %841 = vmatpush.bf16.msrb.mxu3 %v1196_v14  ;;  %803 = vmatmul.bf16.vlgmr.msrb.gmra.mxu0 %v1828_v17  ;;  %v1417_v14 = vld [vmem:[%s2244_s1 + $0x60] sm:$0xf0]  ;;  %v1502_v56 = vld [vmem:[%s2244_s1 + $0x308] sm:$0xf0]  ;;  %v1124_v57 = vor.u32 %v1446_v54, %v1123_v53  ;;  %v1095_v59 = vld [vmem:[%s2244_s1 + $0xf8] sm:$0xf] }
  0x44   :  { %847 = vmatpush.bf16.msra.mxu0 %v1172_v12  ;;  %816 = vmatmul.bf16.vlgmr.msrb.gmra.mxu1 %v1833_v19  ;;  %v1256_v12 = vor.u32 %v1480_v5, %v1255_v4  ;;  %v1509_v50 = vld [vmem:[%s2244_s1 + $0x340] sm:$0xf0]  ;;  %v1439_v60 = vld [vmem:[%s2244_s1 + $0x110] sm:$0xf0]  ;;  %v1319_v61 = vld [vmem:[%s2244_s1 + $0x2b8] sm:$0xf] }
  0x45   :  { %860 = vmatpush.bf16.msra.mxu1 %v1396_v13  ;;  %829 = vmatmul.bf16.vlgmr.msrb.gmra.mxu2 %v1828_v17  ;;  %v1003_v13 = vld [vmem:[%s2244_s1 + $0x48] sm:$0xf]  ;;  %v1495_v62 = vld [vmem:[%s2244_s1 + $0x2d0] sm:$0xf0]  ;;  %v1067_v1 = vld [vmem:[%s2244_s1 + $0xc0] sm:$0xf] }
  0x46   :  { %873 = vmatpush.bf16.msra.mxu2 %v1176_v18  ;;  %842 = vmatmul.bf16.vlgmr.msrb.gmra.mxu3 %v1833_v19  ;;  %v1473_v18 = vld [vmem:[%s2244_s1 + $0x220] sm:$0xf0]  ;;  %v1004_v25 = vor.u32 %v1417_v14, %v1003_v13  ;;  %v1432_v2 = vld [vmem:[%s2244_s1 + $0xd8] sm:$0xf0]  ;;  %v1039_v7 = vld [vmem:[%s2244_s1 + $0x88] sm:$0xf] }
  0x47   :  { %886 = vmatpush.bf16.msra.mxu3 %v1400_v22  ;;  %v1005_v22 = vld [vmem:[%s2244_s1 + $0x64] sm:$0xf0]  ;;  %v1488_v4 = vld [vmem:[%s2244_s1 + $0x298] sm:$0xf0]  ;;  %v1068_v5 = vor.u32 %v1432_v2, %v1067_v1  ;;  %v1425_v8 = vld [vmem:[%s2244_s1 + $0xa0] sm:$0xf0] }
  0x48   :  { %848 = vmatpush.bf16.msra.mxu0 %v1144_v27  ;;  %v1228_v27 = vor.u32 %v1473_v18, %v1227_v16  ;;  %v1263_v9 = vld [vmem:[%s2244_s1 + $0x248] sm:$0xf]  ;;  %v1481_v10 = vld [vmem:[%s2244_s1 + $0x260] sm:$0xf0]  ;;  %v1011_v13 = vld [vmem:[%s2244_s1 + $0x50] sm:$0xf] }
  0x49   :  { %861 = vmatpush.bf16.msra.mxu1 %v1368_v28  ;;  %v1410_v28 = vld [vmem:[%s2244_s1 + $0x28] sm:$0xf0]  ;;  %v1207_v23 = vld [vmem:[%s2244_s1 + $0x1d8] sm:$0xf]  ;;  %v1467_v24 = vld [vmem:[%s2244_s1 + $0x1f0] sm:$0xf0] }
  0x4a   :  { %874 = vmatpush.bf16.msra.mxu2 %v1148_v31  ;;  %v1008_v31 = vor.u32 %v1414_v21, %v1005_v22  ;;  %v1418_v14 = vld [vmem:[%s2244_s1 + $0x68] sm:$0xf0]  ;;  %v983_v21 = vld [vmem:[%s2244_s1 + $0x18] sm:$0xf]  ;;  %v1411_v22 = vld [vmem:[%s2244_s1 + $0x30] sm:$0xf0] }
  0x4b   :  { %887 = vmatpush.bf16.msra.mxu3 %v1372_v34  ;;  %v1460_v34 = vld [vmem:[%s2244_s1 + $0x1b8] sm:$0xf0]  ;;  %v1474_v16 = vld [vmem:[%s2244_s1 + $0x228] sm:$0xf0]  ;;  %v1012_v18 = vor.u32 %v1418_v14, %v1011_v13  ;;  %v151_v35 = vld [vmem:[%s2246_s2] sm:$0x7f] }
  0x4c   :  { %849 = vmatpush.bf16.msra.mxu0 %v1116_v39  ;;  %v976_v39 = vor.u32 %v1410_v28, %v975_v26  ;;  %v1208_v26 = vor.u32 %v1467_v24, %v1207_v23  ;;  %v154_v36 = vperm.slane %v151_v35, 1  ;;  %v155_v37 = vperm.slane %v151_v35, 2 }
  0x4d   :  { %862 = vmatpush.bf16.msra.mxu1 %v1340_v40  ;;  %v1463_v40 = vld [vmem:[%s2244_s1 + $0x1d4] sm:$0xf]  ;;  %vm950_vm5 = vcmask 128004  }
  0x4e   :  { %875 = vmatpush.bf16.msra.mxu2 %v1120_v43  ;;  %v1180_v43 = vor.u32 %v1460_v34, %v1179_v33  ;;  %v1204_v48 = vor.u32 %v1463_v40, %v1201_v41  ;;  %v156_v41 = vperm.slane %v151_v35, 3  ;;  %vm951_vm6 = vmor %vm950_vm5, %vm949_vm4 }
  0x4f   :  { %888 = vmatpush.bf16.msra.mxu3 %v1344_v46  ;;  %v1151_v46 = vld [vmem:[%s2244_s1 + $0x168] sm:$0xf] }
  0x50   :  { %850 = vmatpush.bf16.msra.mxu0 %v1088_v51  ;;  %v1152_v51 = vor.u32 %v1453_v47, %v1151_v46 }
  0x51   :  { %863 = vmatpush.bf16.msra.mxu1 %v1312_v52  ;;  %v1376_v52 = vor.u32 %v1509_v50, %v1375_v49 }
  0x52   :  { %876 = vmatpush.bf16.msra.mxu2 %v1092_v55  ;;  %v1347_v55 = vld [vmem:[%s2244_s1 + $0x2f0] sm:$0xf] }
  0x53   :  { %889 = vmatpush.bf16.msra.mxu3 %v1316_v58  ;;  %v1348_v58 = vor.u32 %v1502_v56, %v1347_v55 }
  0x54   :  { %851 = vmatpush.bf16.msra.mxu0 %v1060_v63  ;;  %v1096_v63 = vor.u32 %v1439_v60, %v1095_v59 }
  0x55   :  { %864 = vmatpush.bf16.msra.mxu1 %v1284_v0  ;;  %v1320_v0 = vor.u32 %v1495_v62, %v1319_v61 }
  0x56   :  { %877 = vmatpush.bf16.msra.mxu2 %v1064_v3  ;;  %v1291_v3 = vld [vmem:[%s2244_s1 + $0x280] sm:$0xf] }
  0x57   :  { %890 = vmatpush.bf16.msra.mxu3 %v1288_v6  ;;  %v1292_v6 = vor.u32 %v1488_v4, %v1291_v3  ;;  %v158_v4 = vperm.slane %v151_v35, 5 }
  0x58   :  { %852 = vmatpush.bf16.msra.mxu0 %v1032_v11  ;;  %v1040_v11 = vor.u32 %v1425_v8, %v1039_v7  ;;  %v159_v7 = vperm.slane %v151_v35, 6 }
  0x59   :  { %865 = vmatpush.bf16.msra.mxu1 %v1256_v12  ;;  %v1264_v12 = vor.u32 %v1481_v10, %v1263_v9 }
  0x5a   :  { %878 = vmatpush.bf16.msra.mxu2 %v1036_v15  ;;  %v1235_v15 = vld [vmem:[%s2244_s1 + $0x210] sm:$0xf] }
  0x5b   :  { %891 = vmatpush.bf16.msra.mxu3 %v1260_v20  ;;  %v1236_v20 = vor.u32 %v1474_v16, %v1235_v15 }
  0x5c   :  { %853 = vmatpush.bf16.msra.mxu0 %v1004_v25  ;;  %v984_v25 = vor.u32 %v1411_v22, %v983_v21 }
  0x5d   :  { %866 = vmatpush.bf16.msra.mxu1 %v1228_v27 }
  0x5e   :  { %879 = vmatpush.bf16.msra.mxu2 %v1008_v31 }
  0x5f   :  { %892 = vmatpush.bf16.msra.mxu3 %v1232_v32 }
  0x60   :  { %854 = vmatpush.bf16.msra.mxu0 %v976_v39  ;;  %v153_v39 = vperm.slane %v151_v35, 0 }
  0x61   :  { %867 = vmatpush.bf16.msra.mxu1 %v1200_v42 }
  0x62   :  { %880 = vmatpush.bf16.msra.mxu2 %v980_v45 }
  0x63   :  { %893 = vmatpush.bf16.msra.mxu3 %v1204_v48  ;;  %855 = vmatmul.bf16.vlgmr.msra.gmra.mxu0 %v1828_v17 }
  0x64   :  { %899 = vmatpush.bf16.msrb.mxu0 %v1180_v43  ;;  %868 = vmatmul.bf16.vlgmr.msra.gmra.mxu1 %v1833_v19 }
  0x65   :  { %912 = vmatpush.bf16.msrb.mxu1 %v1404_v44  ;;  %881 = vmatmul.bf16.vlgmr.msra.gmra.mxu2 %v1828_v17 }
  0x66   :  { %894 = vmatmul.bf16.vlgmr.msra.gmra.mxu3 %v1833_v19 }
  0x68   :  { %900 = vmatpush.bf16.msrb.mxu0 %v1152_v51 }
  0x69   :  { %913 = vmatpush.bf16.msrb.mxu1 %v1376_v52 }
  0x6c   :  { %901 = vmatpush.bf16.msrb.mxu0 %v1124_v57 }
  0x6d   :  { %914 = vmatpush.bf16.msrb.mxu1 %v1348_v58 }
  0x70   :  { %902 = vmatpush.bf16.msrb.mxu0 %v1096_v63 }
  0x71   :  { %915 = vmatpush.bf16.msrb.mxu1 %v1320_v0 }
  0x74   :  { %903 = vmatpush.bf16.msrb.mxu0 %v1068_v5  ;;  %v157_v5 = vperm.slane %v151_v35, 4 }
  0x75   :  { %916 = vmatpush.bf16.msrb.mxu1 %v1292_v6 }
  0x78   :  { %904 = vmatpush.bf16.msrb.mxu0 %v1040_v11 }
  0x79   :  { %917 = vmatpush.bf16.msrb.mxu1 %v1264_v12 }
  0x7c   :  { %905 = vmatpush.bf16.msrb.mxu0 %v1012_v18 }
  0x7d   :  { %918 = vmatpush.bf16.msrb.mxu1 %v1236_v20 }
  0x80   :  { %906 = vmatpush.bf16.msrb.mxu0 %v984_v25 }
  0x81   :  { %919 = vmatpush.bf16.msrb.mxu1 %v1208_v26 }
  0x83   :  { %907 = vmatmul.bf16.vlgmr.msrb.gmra.mxu0 %v1828_v17 }
  0x84   :  { %920 = vmatmul.bf16.vlgmr.msrb.gmra.mxu1 %v1833_v19 }
  0xa5   :  { %v765_v28 = vpop.f32.mrf.mxu1 }
  0xa6   :  { %v752_v27 = vpop.f32.mrf.mxu0 }
  0xa7   :  { %v753_v42 = vadd.f32 %v752_v27, %v153_v39 }
  0xa9   :  { %v791_v30 = vpop.f32.mrf.mxu3  ;;  %v766_v49 = vadd.f32 %v765_v28, %v753_v42 }
  0xaa   :  { %v778_v29 = vpop.f32.mrf.mxu2 }
  0xab   :  { %v779_v40 = vadd.f32 %v778_v29, %v154_v36 }
  0xad   :  { %v767_v32 = vpop.f32.mrf.mxu1  ;;  %v792_v43 = vadd.f32 %v791_v30, %v779_v40 }
  0xae   :  { %v754_v31 = vpop.f32.mrf.mxu0 }
  0xaf   :  { %v932_v50 = vrot.slane %v792_v43, 6 }
  0xb1   :  { %v793_v34 = vpop.f32.mrf.mxu3  ;;  %v938_v55 = vsel %vm937_vm0, %v766_v49, %v932_v50 }
  0xb2   :  { %v780_v33 = vpop.f32.mrf.mxu2 }
  0xc0   :  { %v804_v38 = vpop.f32.mrf.mxu0 }
  0xc1   :  { %v805_v17 = vadd.f32 %v804_v38, %v155_v37  ;;  %v817_v19 = vpop.f32.mrf.mxu1 }
  0xc3   :  { %v818_v44 = vadd.f32 %v817_v19, %v805_v17 }
  0xc5   :  { %v933_v51 = vrot.slane %v818_v44, 4 }
  0xc8   :  { %v830_v45 = vpop.f32.mrf.mxu2  ;;  %v806_v48 = vpop.f32.mrf.mxu0 }
  0xc9   :  { %v831_v46 = vadd.f32 %v830_v45, %v156_v41  ;;  %v843_v47 = vpop.f32.mrf.mxu3  ;;  %v819_v54 = vpop.f32.mrf.mxu1 }
  0xcb   :  { %v844_v52 = vadd.f32 %v843_v47, %v831_v46 }
  0xcd   :  { %v934_v53 = vrot.slane %v844_v52, 2 }
  0xcf   :  { %v940_v56 = vsel %vm939_vm1, %v933_v51, %v934_v53 }
  0xd0   :  { %v942_v57 = vsel %vm941_vm2, %v938_v55, %v940_v56  ;;  %v832_v58 = vpop.f32.mrf.mxu2 }
  0xd1   :  { %947 = vst [vmem:[%s2247_s3] sm:$0xff] %v942_v57  ;;  %v845_v59 = vpop.f32.mrf.mxu3 }
  0xe0   :  { %v856_v60 = vpop.f32.mrf.mxu0 }
  0xe1   :  { %v869_v61 = vpop.f32.mrf.mxu1  ;;  %v857_v8 = vadd.f32 %v856_v60, %v157_v5 }
  0xe3   :  { %v870_v13 = vadd.f32 %v869_v61, %v857_v8 }
  0xe8   :  { %v882_v62 = vpop.f32.mrf.mxu2  ;;  %v858_v63 = vpop.f32.mrf.mxu0 }
  0xe9   :  { %v895_v0 = vpop.f32.mrf.mxu3  ;;  %v871_v1 = vpop.f32.mrf.mxu1  ;;  %v883_v6 = vadd.f32 %v882_v62, %v158_v4 }
  0xeb   :  { %v896_v9 = vadd.f32 %v895_v0, %v883_v6 }
  0xed   :  { %v935_v14 = vrot.slane %v896_v9, 6 }
  0xef   :  { %v943_v18 = vsel %vm937_vm0, %v870_v13, %v935_v14 }
  0xf0   :  { %v884_v2 = vpop.f32.mrf.mxu2 }
  0xf1   :  { %v897_v3 = vpop.f32.mrf.mxu3 }
 0x100   :  { %v908_v10 = vpop.f32.mrf.mxu0 }
 0x101   :  { %v909_v11 = vadd.f32 %v908_v10, %v159_v7  ;;  %v921_v12 = vpop.f32.mrf.mxu1 }
 0x103   :  { %v922_v15 = vadd.f32 %v921_v12, %v909_v11 }
 0x105   :  { %v936_v16 = vrot.slane %v922_v15, 4 }
 0x107   :  { %v944_v20 = vsel %vm941_vm2, %v943_v18, %v936_v16 }
 0x108   :  { %952 = vst.msk [vmem:[%s2247_s3 + $0x8] sm:$0x3f] %vm951_vm6, %v944_v20  ;;  %v910_v21 = vpop.f32.mrf.mxu0 }
 0x109   :  { %v923_v22 = vpop.f32.mrf.mxu1 }

</bundles_post_ra>
